<compile_context>
chip_gen: v7x
topology: tpu7x:2x2x1
jax: 0.10.0
libtpu: 0.0.40
codegen_flags: <defaults>
</compile_context>

<pallas_src>
import functools

import jax
import jax.numpy as jnp
from jax.experimental import pallas as pl
from jax.experimental.pallas import tpu as pltpu


# ---------------------------------------------------------------------------
# Kernel
# ---------------------------------------------------------------------------
def decision_tree_kernel(x_ref,
                         w0_ref, b0_ref,
                         w1_ref, b1_ref,
                         w2_ref, b2_ref,
                         wo_ref, bo_ref,
                         o_ref):
    """Fused forward for one batch tile:
         h = relu(x @ W0 + b0)
         h = relu(h @ W1 + b1)
         h = relu(h @ W2 + b2)
         o = h @ Wo + bo
       Dots on the MXU with f32 accumulation; bias+ReLU in f32, intermediate
       activations re-cast to the weight dtype (bf16) between layers and never
       leave VMEM.  x arrives as f32 and is cast in-kernel."""
    cdt = w0_ref.dtype  # compute (MXU input) dtype, e.g. bfloat16

    h = x_ref[...].astype(cdt)  # (tm, F)

    h = jnp.dot(h, w0_ref[...], preferred_element_type=jnp.float32) + b0_ref[...]
    h = jnp.maximum(h, 0.0).astype(cdt)

    h = jnp.dot(h, w1_ref[...], preferred_element_type=jnp.float32) + b1_ref[...]
    h = jnp.maximum(h, 0.0).astype(cdt)

    h = jnp.dot(h, w2_ref[...], preferred_element_type=jnp.float32) + b2_ref[...]
    h = jnp.maximum(h, 0.0).astype(cdt)

    out = jnp.dot(h, wo_ref[...], preferred_element_type=jnp.float32) + bo_ref[...]
    o_ref[...] = out.astype(o_ref.dtype)


# ---------------------------------------------------------------------------
# Wrapper: tile choice + grid + pallas_call
# ---------------------------------------------------------------------------
def _round_up(x, m):
    return ((x + m - 1) // m) * m


def prepare_params(params, compute_dtype=jnp.bfloat16):
    """One-time packing: weights to the MXU compute dtype, biases stay f32.
    Done outside the per-call path so no XLA convert ops run per forward."""
    packed = {}
    for k, v in params.items():
        if k.startswith("w"):
            packed[k] = jnp.asarray(v, compute_dtype)
        else:
            packed[k] = jnp.asarray(v, jnp.float32)
    return packed


@jax.jit
def decision_tree_forward(x, packed):
    """x: (B, F) float32.  packed: output of prepare_params.

    Streams batch tiles over a parallel grid (weights/biases VMEM-resident via
    constant index maps).  Feature / hidden / class dims are NOT padded: the
    BlockSpec feature dims equal the full array dims, so only real bytes move
    HBM<->VMEM.  Returns (B, C) float32."""
    B, F = x.shape
    H = packed["w0"].shape[1]          # hidden = 2 * input_size
    C = packed["wo"].shape[1]          # num_classes

    # Batch tile: multiple of 16 (bf16 sublane packing), capped at 2048, and
    # kept to >= 2 grid steps when the batch allows (v7x megacore).
    if B <= 16:
        tm = _round_up(max(B, 16), 16)
    else:
        tm = min(2048, _round_up(pl.cdiv(B, 2), 16))
        tm = max(tm, 16)
    B_pad = _round_up(B, tm)
    grid = (B_pad // tm,)

    if B_pad != B:
        x = jnp.pad(x, ((0, B_pad - B), (0, 0)))

    # Explicit specs; feature-axis block dims equal full array dims (legal).
    x_spec = pl.BlockSpec((tm, F), lambda i: (i, 0))
    w0_spec = pl.BlockSpec((F, H), lambda i: (0, 0))
    w1_spec = pl.BlockSpec((H, H), lambda i: (0, 0))
    w2_spec = pl.BlockSpec((H, H), lambda i: (0, 0))
    wo_spec = pl.BlockSpec((H, C), lambda i: (0, 0))
    b0_spec = pl.BlockSpec((1, H), lambda i: (0, 0))
    b1_spec = pl.BlockSpec((1, H), lambda i: (0, 0))
    b2_spec = pl.BlockSpec((1, H), lambda i: (0, 0))
    bo_spec = pl.BlockSpec((1, C), lambda i: (0, 0))
    out_spec = pl.BlockSpec((tm, C), lambda i: (i, 0))

    out_padded = pl.pallas_call(
        decision_tree_kernel,
        out_shape=jax.ShapeDtypeStruct((B_pad, C), jnp.float32),
        grid=grid,
        in_specs=[x_spec,
                  w0_spec, b0_spec,
                  w1_spec, b1_spec,
                  w2_spec, b2_spec,
                  wo_spec, bo_spec],
        out_specs=out_spec,
        compiler_params=pltpu.CompilerParams(
            dimension_semantics=("parallel",),
            vmem_limit_bytes=32 * 1024 * 1024,
        ),
    )(x,
      packed["w0"], packed["b0"],
      packed["w1"], packed["b1"],
      packed["w2"], packed["b2"],
      packed["wo"], packed["bo"])

    return out_padded[:B, :]


# ---------------------------------------------------------------------------
# Parameter init (matches PyTorch DecisionTree(depth=3) parameter shapes,
# stored transposed: Linear(in, out) weight kept as (in, out)).
# ---------------------------------------------------------------------------
def init_params(key, input_size, num_classes, depth=3):
    assert depth == 3  # module structure hard-wired in the fused kernel
    hidden = 2 * input_size
    keys = jax.random.split(key, 8)

    def linear(kw, kb, fan_in, fan_out):
        bound = 1.0 / jnp.sqrt(fan_in)
        w = jax.random.uniform(kw, (fan_in, fan_out), jnp.float32, -bound, bound)
        b = jax.random.uniform(kb, (1, fan_out), jnp.float32, -bound, bound)
        return w, b

    w0, b0 = linear(keys[0], keys[1], input_size, hidden)    # Linear(F, 2F)
    w1, b1 = linear(keys[2], keys[3], hidden, hidden)        # Linear(2F, 2F)
    w2, b2 = linear(keys[4], keys[5], hidden, hidden)        # Linear(2F, 2F)
    wo, bo = linear(keys[6], keys[7], hidden, num_classes)   # Linear(2F, C)
    return dict(w0=w0, b0=b0, w1=w1, b1=b1, w2=w2, b2=b2, wo=wo, bo=bo)


# ---------------------------------------------------------------------------
# Pure-JAX references
# ---------------------------------------------------------------------------
def reference_forward_matched(x, p, compute_dtype=jnp.bfloat16):
    """Mirrors the kernel's precision flow (bf16 MXU inputs, f32 accum)."""
    def dense(h, w, b):
        return jnp.dot(h.astype(compute_dtype), w.astype(compute_dtype),
                       preferred_element_type=jnp.float32) + b
    h = jnp.maximum(dense(x, p["w0"], p["b0"]), 0.0)
    h = jnp.maximum(dense(h, p["w1"], p["b1"]), 0.0)
    h = jnp.maximum(dense(h, p["w2"], p["b2"]), 0.0)
    return dense(h, p["wo"], p["bo"])


def reference_forward_f32(x, p):
    h = jnp.maximum(x @ p["w0"] + p["b0"], 0.0)
    h = jnp.maximum(h @ p["w1"] + p["b1"], 0.0)
    h = jnp.maximum(h @ p["w2"] + p["b2"], 0.0)
    return h @ p["wo"] + p["bo"]


# ---------------------------------------------------------------------------
# Main
# ---------------------------------------------------------------------------
if __name__ == "__main__":
    input_size = 16
    num_classes = 4

    key = jax.random.PRNGKey(0)
    k_x, k_p, k_x2 = jax.random.split(key, 3)
    params = init_params(k_p, input_size, num_classes, depth=3)
    packed = prepare_params(params)  # one-time pack (bf16 weights, f32 biases)

    # Small-batch check (shapes consistent with the module).
    batch = 8
    x = jax.random.normal(k_x, (batch, input_size), dtype=jnp.float32)
    out = jax.block_until_ready(decision_tree_forward(x, packed))
    ref = reference_forward_matched(x, params)
    assert out.shape == (batch, num_classes)
    assert jnp.allclose(out, ref, atol=2e-3, rtol=2e-3), "mismatch vs matched ref"
    # bf16 MXU inputs => ~1e-2 rel error vs an exact-f32 PyTorch forward.
    assert jnp.allclose(out, reference_forward_f32(x, params),
                        atol=5e-2, rtol=5e-2), "mismatch vs f32 ref"

    # Larger batch exercises the multi-step parallel grid (2 steps of tm=1024).
    big_batch = 2048
    x_big = jax.random.normal(k_x2, (big_batch, input_size), dtype=jnp.float32)
    out_big = jax.block_until_ready(decision_tree_forward(x_big, packed))
    ref_big = reference_forward_matched(x_big, params)
    assert out_big.shape == (big_batch, num_classes)
    assert jnp.allclose(out_big, ref_big, atol=2e-3, rtol=2e-3), "mismatch (big batch)"

    print("KERNEL_OK")
</pallas_src>

<mosaic_0001>
module attributes {stable_mosaic.version = 11 : i64} {
  func.func @decision_tree_kernel(%arg0: i32, %arg1: memref<16x16xf32, #tpu.memory_space<vmem>>, %arg2: memref<16x32xbf16, #tpu.memory_space<vmem>>, %arg3: memref<1x32xf32, #tpu.memory_space<vmem>>, %arg4: memref<32x32xbf16, #tpu.memory_space<vmem>>, %arg5: memref<1x32xf32, #tpu.memory_space<vmem>>, %arg6: memref<32x32xbf16, #tpu.memory_space<vmem>>, %arg7: memref<1x32xf32, #tpu.memory_space<vmem>>, %arg8: memref<32x4xbf16, #tpu.memory_space<vmem>>, %arg9: memref<1x4xf32, #tpu.memory_space<vmem>>, %arg10: memref<16x4xf32, #tpu.memory_space<vmem>>) attributes {dimension_semantics = [#tpu.dimension_semantics<parallel>], iteration_bounds = array<i64: 1>, scalar_prefetch = 0 : i64, scratch_operands = 0 : i64, tpu.core_type = #tpu.core_type<tc>, window_params = [{transform_indices = @transform_0, window_bounds = array<i64: 16, 16>}, {pipeline_mode = #tpu.pipeline_mode<synchronous>, transform_indices = @transform_1, window_bounds = array<i64: 16, 32>}, {pipeline_mode = #tpu.pipeline_mode<synchronous>, transform_indices = @transform_2, window_bounds = array<i64: 1, 32>}, {pipeline_mode = #tpu.pipeline_mode<synchronous>, transform_indices = @transform_3, window_bounds = array<i64: 32, 32>}, {pipeline_mode = #tpu.pipeline_mode<synchronous>, transform_indices = @transform_4, window_bounds = array<i64: 1, 32>}, {pipeline_mode = #tpu.pipeline_mode<synchronous>, transform_indices = @transform_5, window_bounds = array<i64: 32, 32>}, {pipeline_mode = #tpu.pipeline_mode<synchronous>, transform_indices = @transform_6, window_bounds = array<i64: 1, 32>}, {pipeline_mode = #tpu.pipeline_mode<synchronous>, transform_indices = @transform_7, window_bounds = array<i64: 32, 4>}, {pipeline_mode = #tpu.pipeline_mode<synchronous>, transform_indices = @transform_8, window_bounds = array<i64: 1, 4>}, {transform_indices = @transform_9, window_bounds = array<i64: 16, 4>}]} {
    %c0 = arith.constant 0 : index
    %c0_0 = arith.constant 0 : index
    %0 = vector.load %arg1[%c0, %c0_0] : memref<16x16xf32, #tpu.memory_space<vmem>>, vector<16x16xf32>
    %1 = arith.truncf %0 : vector<16x16xf32> to vector<16x16xbf16>
    %c0_1 = arith.constant 0 : index
    %c0_2 = arith.constant 0 : index
    %2 = vector.load %arg2[%c0_1, %c0_2] : memref<16x32xbf16, #tpu.memory_space<vmem>>, vector<16x32xbf16>
    %cst = arith.constant dense<0.000000e+00> : vector<16x32xf32>
    %3 = tpu.matmul %1, %2, %cst {dimension_numbers = #tpu.dot_dimension_numbers<[1], [0], [0], [1], [0, 0, 1, 1], [], []>} : vector<16x16xbf16>, vector<16x32xbf16>, vector<16x32xf32> -> vector<16x32xf32>
    %c0_3 = arith.constant 0 : index
    %c0_4 = arith.constant 0 : index
    %4 = vector.load %arg3[%c0_3, %c0_4] : memref<1x32xf32, #tpu.memory_space<vmem>>, vector<1x32xf32>
    %5 = vector.broadcast %4 : vector<1x32xf32> to vector<16x32xf32>
    %6 = arith.addf %3, %5 : vector<16x32xf32>
    %cst_5 = arith.constant 0.000000e+00 : f32
    %7 = vector.broadcast %cst_5 : f32 to vector<16x32xf32>
    %8 = arith.maximumf %6, %7 : vector<16x32xf32>
    %9 = arith.truncf %8 : vector<16x32xf32> to vector<16x32xbf16>
    %c0_6 = arith.constant 0 : index
    %c0_7 = arith.constant 0 : index
    %10 = vector.load %arg4[%c0_6, %c0_7] : memref<32x32xbf16, #tpu.memory_space<vmem>>, vector<32x32xbf16>
    %cst_8 = arith.constant dense<0.000000e+00> : vector<16x32xf32>
    %11 = tpu.matmul %9, %10, %cst_8 {dimension_numbers = #tpu.dot_dimension_numbers<[1], [0], [0], [1], [0, 0, 1, 1], [], []>} : vector<16x32xbf16>, vector<32x32xbf16>, vector<16x32xf32> -> vector<16x32xf32>
    %c0_9 = arith.constant 0 : index
    %c0_10 = arith.constant 0 : index
    %12 = vector.load %arg5[%c0_9, %c0_10] : memref<1x32xf32, #tpu.memory_space<vmem>>, vector<1x32xf32>
    %13 = vector.broadcast %12 : vector<1x32xf32> to vector<16x32xf32>
    %14 = arith.addf %11, %13 : vector<16x32xf32>
    %cst_11 = arith.constant 0.000000e+00 : f32
    %15 = vector.broadcast %cst_11 : f32 to vector<16x32xf32>
    %16 = arith.maximumf %14, %15 : vector<16x32xf32>
    %17 = arith.truncf %16 : vector<16x32xf32> to vector<16x32xbf16>
    %c0_12 = arith.constant 0 : index
    %c0_13 = arith.constant 0 : index
    %18 = vector.load %arg6[%c0_12, %c0_13] : memref<32x32xbf16, #tpu.memory_space<vmem>>, vector<32x32xbf16>
    %cst_14 = arith.constant dense<0.000000e+00> : vector<16x32xf32>
    %19 = tpu.matmul %17, %18, %cst_14 {dimension_numbers = #tpu.dot_dimension_numbers<[1], [0], [0], [1], [0, 0, 1, 1], [], []>} : vector<16x32xbf16>, vector<32x32xbf16>, vector<16x32xf32> -> vector<16x32xf32>
    %c0_15 = arith.constant 0 : index
    %c0_16 = arith.constant 0 : index
    %20 = vector.load %arg7[%c0_15, %c0_16] : memref<1x32xf32, #tpu.memory_space<vmem>>, vector<1x32xf32>
    %21 = vector.broadcast %20 : vector<1x32xf32> to vector<16x32xf32>
    %22 = arith.addf %19, %21 : vector<16x32xf32>
    %cst_17 = arith.constant 0.000000e+00 : f32
    %23 = vector.broadcast %cst_17 : f32 to vector<16x32xf32>
    %24 = arith.maximumf %22, %23 : vector<16x32xf32>
    %25 = arith.truncf %24 : vector<16x32xf32> to vector<16x32xbf16>
    %c0_18 = arith.constant 0 : index
    %c0_19 = arith.constant 0 : index
    %26 = vector.load %arg8[%c0_18, %c0_19] : memref<32x4xbf16, #tpu.memory_space<vmem>>, vector<32x4xbf16>
    %cst_20 = arith.constant dense<0.000000e+00> : vector<16x4xf32>
    %27 = tpu.matmul %25, %26, %cst_20 {dimension_numbers = #tpu.dot_dimension_numbers<[1], [0], [0], [1], [0, 0, 1, 1], [], []>} : vector<16x32xbf16>, vector<32x4xbf16>, vector<16x4xf32> -> vector<16x4xf32>
    %c0_21 = arith.constant 0 : index
    %c0_22 = arith.constant 0 : index
    %28 = vector.load %arg9[%c0_21, %c0_22] : memref<1x4xf32, #tpu.memory_space<vmem>>, vector<1x4xf32>
    %29 = vector.broadcast %28 : vector<1x4xf32> to vector<16x4xf32>
    %30 = arith.addf %27, %29 : vector<16x4xf32>
    %c0_23 = arith.constant 0 : index
    %c0_24 = arith.constant 0 : index
    %31 = vector.load %arg10[%c0_23, %c0_24] : memref<16x4xf32, #tpu.memory_space<vmem>>, vector<16x4xf32>
    tpu.vector_store %arg10[%c0_23, %c0_24], %30 {strides = array<i32>} : memref<16x4xf32, #tpu.memory_space<vmem>>, vector<16x4xf32>,
    return
  }
  func.func @transform_0(%arg0: i32) -> (i32, i32) {
    %c0_i32 = arith.constant 0 : i32
    %c0_i32_0 = arith.constant 0 : i32
    return %arg0, %c0_i32 : i32, i32
  }
  func.func @transform_1(%arg0: i32) -> (i32, i32) {
    %c0_i32 = arith.constant 0 : i32
    %c0_i32_0 = arith.constant 0 : i32
    %c0_i32_1 = arith.constant 0 : i32
    return %c0_i32, %c0_i32_0 : i32, i32
  }
  func.func @transform_2(%arg0: i32) -> (i32, i32) {
    %c0_i32 = arith.constant 0 : i32
    %c0_i32_0 = arith.constant 0 : i32
    %c0_i32_1 = arith.constant 0 : i32
    return %c0_i32, %c0_i32_0 : i32, i32
  }
  func.func @transform_3(%arg0: i32) -> (i32, i32) {
    %c0_i32 = arith.constant 0 : i32
    %c0_i32_0 = arith.constant 0 : i32
    %c0_i32_1 = arith.constant 0 : i32
    return %c0_i32, %c0_i32_0 : i32, i32
  }
  func.func @transform_4(%arg0: i32) -> (i32, i32) {
    %c0_i32 = arith.constant 0 : i32
    %c0_i32_0 = arith.constant 0 : i32
    %c0_i32_1 = arith.constant 0 : i32
    return %c0_i32, %c0_i32_0 : i32, i32
  }
  func.func @transform_5(%arg0: i32) -> (i32, i32) {
    %c0_i32 = arith.constant 0 : i32
    %c0_i32_0 = arith.constant 0 : i32
    %c0_i32_1 = arith.constant 0 : i32
    return %c0_i32, %c0_i32_0 : i32, i32
  }
  func.func @transform_6(%arg0: i32) -> (i32, i32) {
    %c0_i32 = arith.constant 0 : i32
    %c0_i32_0 = arith.constant 0 : i32
    %c0_i32_1 = arith.constant 0 : i32
    return %c0_i32, %c0_i32_0 : i32, i32
  }
  func.func @transform_7(%arg0: i32) -> (i32, i32) {
    %c0_i32 = arith.constant 0 : i32
    %c0_i32_0 = arith.constant 0 : i32
    %c0_i32_1 = arith.constant 0 : i32
    return %c0_i32, %c0_i32_0 : i32, i32
  }
  func.func @transform_8(%arg0: i32) -> (i32, i32) {
    %c0_i32 = arith.constant 0 : i32
    %c0_i32_0 = arith.constant 0 : i32
    %c0_i32_1 = arith.constant 0 : i32
    return %c0_i32, %c0_i32_0 : i32, i32
  }
  func.func @transform_9(%arg0: i32) -> (i32, i32) {
    %c0_i32 = arith.constant 0 : i32
    %c0_i32_0 = arith.constant 0 : i32
    return %arg0, %c0_i32 : i32, i32
  }
}

</mosaic_0001>

<bundles_post_ra>
// kernel: decision_tree_forward.1
= control target key start
LH: loop header
LB: loop body
LE: loop exit
PB: predicated region body
PF: predicated region fallthrough
CT: control target
= control target key end

     0   :  { %v379_v0 = vmov 0.0   ;;  %vm380_vm0 = vmmov 0   ;;  %vm51_vm1 = vcmask 130048   ;;  %vm122_vm2 = vcmask 261120   ;;  %s483_s1 = inlined_call_operand.vmem [shape: bf16[16,32], index: 1, kind: input, shape index: {}]   ;;  %s484_s0 = inlined_call_operand.vmem [shape: f32[16,16], index: 0, kind: input, shape index: {}]   ;;  %s485_s3 = inlined_call_operand.vmem [shape: bf16[32,32], index: 3, kind: input, shape index: {}]   ;;  %s486_s2 = inlined_call_operand.vmem [shape: f32[1,32], index: 2, kind: input, shape index: {}]   ;;  %s487_s5 = inlined_call_operand.vmem [shape: bf16[32,32], index: 5, kind: input, shape index: {}]   ;;  %s488_s4 = inlined_call_operand.vmem [shape: f32[1,32], index: 4, kind: input, shape index: {}]   ;;  %s489_s7 = inlined_call_operand.vmem [shape: bf16[32,4], index: 7, kind: input, shape index: {}]   ;;  %s490_s6 = inlined_call_operand.vmem [shape: f32[1,32], index: 6, kind: input, shape index: {}]   ;;  %s491_s8 = inlined_call_operand.vmem [shape: f32[1,4], index: 8, kind: input, shape index: {}]   ;;  %s492_s9 = inlined_call_operand.vmem [shape: f32[16,4], index: 9, kind: output, shape index: {}]  }
   0x1   :  { %340 = vmatprep.subr.bf16.mxu0 %v379_v0  ;;  %v372_v1 = vld [vmem:[%s483_s1] sm:$0xff]   ;;  %342 = vmatprep.mubr.msk.bf16.mxu0 %vm380_vm0, %v379_v0  ;;  %v34_v3 = vld [vmem:[%s484_s0 + $0x8] sm:$0xff]  ;;  %vm307_vm3 = vcmask 31744  }
   0x2   :  { %v33_v2 = vld [vmem:[%s484_s0] sm:$0xff]  ;;  %346 = vmatprep.subr.bf16.mxu1 %v379_v0  ;;  %350 = vmatprep.mubr.msk.bf16.mxu1 %vm380_vm0, %v379_v0  ;;  %v374_v6 = vld [vmem:[%s485_s3 + $0x8] sm:$0xff]  }
   0x3   :  { %341 = vmatpush3.bf16.msra.mxu0 %v372_v1  ;;  %v35_v4 = vpack.c.bf16 %v34_v3, %v33_v2  ;;  %v373_v5 = vld [vmem:[%s485_s3] sm:$0xff]   ;;  %v376_v18 = vld [vmem:[%s487_s5 + $0x8] sm:$0xff]  }
   0x4   :  { %354 = vmatprep.subr.bf16.mxu0 %v379_v0  ;;  %347 = vmatpush3.bf16.msra.mxu1 %v373_v5  ;;  %v314_v7 = vld [vmem:[%s486_s2] ss:$0 sm:$0xff]  ;;  %v378_v30 = vld [vmem:[%s489_s7 + $0x8] sm:$0xff]  }
   0x5   :  { %348 = vmatprep.subr.bf16.mxu1 %v379_v0  ;;  %v375_v17 = vld [vmem:[%s487_s5] sm:$0xff]  }
   0x6   :  { %343 = vmatmul.mubr.msk.bf16.vlgmr.msra.gmra.mrb[0].mxu0 %vm51_vm1, %v35_v4  ;;  %v317_v19 = vld [vmem:[%s488_s4] ss:$0 sm:$0xff] }
   0x7   :  { %358 = vmatprep.mubr.msk.bf16.mxu0 %vm380_vm0, %v379_v0  ;;  %355 = vmatpush3.bf16.msra.mxu0 %v375_v17  ;;  %v377_v29 = vld [vmem:[%s489_s7] sm:$0xff]  }
   0x8   :  { %349 = vmatpush3.bf16.msra.mxu1 %v374_v6  ;;  %356 = vmatprep.subr.bf16.mxu0 %v379_v0  ;;  %v321_v31 = vld [vmem:[%s490_s6] ss:$0 sm:$0xff] }
   0x9   :  { %362 = vmatprep.subr.bf16.mxu1 %v379_v0  ;;  %v325_v41 = vld [vmem:[%s491_s8] ss:$0 sm:$0xff] }
   0xb   :  { %357 = vmatpush3.bf16.msra.mxu0 %v376_v18 }
  0xd9   :  { %v89_v8 = vpop.f32.mrb[0].mxu0 }
  0xda   :  { %v90_v9 = vadd.f32 %v314_v7, %v89_v8  ;;  %v344_v10 = vpop.f32.mrb[1].mxu0 }
  0xdb   :  { %v92_v11 = vpop.f32.mrb[2].mxu0 }
  0xdc   :  { %v93_v12 = vadd.f32 %v314_v7, %v92_v11  ;;  %v345_v13 = vpop.f32.mrb[3].mxu0  ;;  %v96_v14 = vmax.f32 %v90_v9, 0.0 }
  0xde   :  { %v97_v15 = vmax.f32 %v93_v12, 0.0 }
  0xe0   :  { %v98_v16 = vpack.c.bf16 %v97_v15, %v96_v14 }
  0xe2   :  { %351 = vmatmul.mubr.msk.bf16.vlgmr.msra.gmra.mrb[0].mxu1 %vm122_vm2, %v98_v16 }
  0xe3   :  { %366 = vmatprep.mubr.msk.bf16.mxu1 %vm380_vm0, %v379_v0  ;;  %363 = vmatpush3.bf16.msra.mxu1 %v377_v29 }
  0xe4   :  { %364 = vmatprep.subr.bf16.mxu1 %v379_v0 }
  0xe7   :  { %365 = vmatpush3.bf16.msra.mxu1 %v378_v30 }
 0x1b5   :  { %v160_v20 = vpop.f32.mrb[0].mxu1 }
 0x1b6   :  { %v161_v21 = vadd.f32 %v317_v19, %v160_v20  ;;  %v352_v22 = vpop.f32.mrb[1].mxu1 }
 0x1b7   :  { %v163_v23 = vpop.f32.mrb[2].mxu1 }
 0x1b8   :  { %v164_v24 = vadd.f32 %v317_v19, %v163_v23  ;;  %v353_v25 = vpop.f32.mrb[3].mxu1  ;;  %v167_v26 = vmax.f32 %v161_v21, 0.0 }
 0x1ba   :  { %v168_v27 = vmax.f32 %v164_v24, 0.0 }
 0x1bc   :  { %v169_v28 = vpack.c.bf16 %v168_v27, %v167_v26 }
 0x1be   :  { %359 = vmatmul.mubr.msk.bf16.vlgmr.msra.gmra.mrb[4].mxu0 %vm122_vm2, %v169_v28 }
 0x291   :  { %v230_v32 = vpop.f32.mrb[4].mxu0 }
 0x292   :  { %v231_v33 = vadd.f32 %v321_v31, %v230_v32  ;;  %v360_v34 = vpop.f32.mrb[5].mxu0 }
 0x293   :  { %v233_v35 = vpop.f32.mrb[6].mxu0 }
 0x294   :  { %v234_v36 = vadd.f32 %v321_v31, %v233_v35  ;;  %v361_v37 = vpop.f32.mrb[7].mxu0  ;;  %v237_v38 = vmax.f32 %v231_v33, 0.0 }
 0x296   :  { %v238_v39 = vmax.f32 %v234_v36, 0.0 }
 0x298   :  { %v239_v40 = vpack.c.bf16 %v238_v39, %v237_v38 }
 0x29a   :  { %367 = vmatmul.mubr.msk.bf16.vlgmr.msra.gmra.mrb[4].mxu1 %vm122_vm2, %v239_v40 }
 0x36d   :  { %v300_v42 = vpop.f32.mrb[4].mxu1 }
 0x36e   :  { %v301_v43 = vadd.f32 %v325_v41, %v300_v42  ;;  %v368_v44 = vpop.f32.mrb[5].mxu1 }
 0x36f   :  { %v303_v45 = vpop.f32.mrb[6].mxu1 }
 0x370   :  { %308 = vst.msk [vmem:[%s492_s9] sm:$0xff] %vm307_vm3, %v301_v43  ;;  %v304_v46 = vadd.f32 %v325_v41, %v303_v45  ;;  %v369_v47 = vpop.f32.mrb[7].mxu1 }
 0x372   :  { %309 = vst.msk [vmem:[%s492_s9 + $0x8] sm:$0xff] %vm307_vm3, %v304_v46 }

</bundles_post_ra>
